<compile_context>
chip_gen: v7x
topology: tpu7x:2x2x1
jax: 0.10.0
libtpu: 0.0.40
codegen_flags: <defaults>
</compile_context>

<pallas_src>
import jax
import jax.numpy as jnp
from jax import lax
from jax.experimental import pallas as pl
from jax.experimental.pallas import tpu as pltpu


def _make_conv3x3_relu_kernel(H, W, Cin, Cout, NB):
    """Returns a kernel closed over the static problem geometry."""
    HW = H * W
    LANES = NB * HW

    def kernel(x_ref, w_ref, b_ref, o_ref):
        # x_ref : (NB, Cin, HW + 2*(W+1)) bf16   CHW-flattened input, flat-axis zero pad
        # w_ref : (Cout, 9*Cin)           bf16   tap-major, channel-minor weights
        # b_ref : (Cout, 1)               f32    bias (per-sublane constant)
        # o_ref : (NB, Cout, HW)          f32    lane-dense output
        col = lax.broadcasted_iota(jnp.int32, (1, LANES), 1) % W
        not_left = col != 0          # kw=0 tap would read previous row's last col
        not_right = col != (W - 1)   # kw=2 tap would read next row's first col

        taps = []
        for kh in range(3):
            for kw in range(3):
                off = kh * W + kw                       # static lane offset in [0, 2W+2]
                if NB == 1:
                    patch = x_ref[0, :, off:off + HW]   # (Cin, HW): pure lane shift
                else:
                    # fold NB batches onto the lane axis (HW is 128-aligned here)
                    patch = jnp.concatenate(
                        [x_ref[n, :, off:off + HW] for n in range(NB)], axis=1)
                if kw == 0:
                    patch = jnp.where(not_left, patch, 0)
                elif kw == 2:
                    patch = jnp.where(not_right, patch, 0)
                taps.append(patch)

        # im2col staging: one fat K = 9*Cin contraction instead of 9 K=Cin pushes.
        stage = jnp.concatenate(taps, axis=0)                       # (9*Cin, NB*HW)
        acc = jnp.dot(w_ref[...], stage,
                      preferred_element_type=jnp.float32)           # (Cout, NB*HW) f32
        acc = jnp.maximum(acc + b_ref[...], 0.0)                    # bias + ReLU
        for n in range(NB):                                         # aligned 128-wide slabs
            o_ref[n, :, :] = acc[:, n * HW:(n + 1) * HW].astype(o_ref.dtype)

    return kernel


def classic_unit_forward(x_nchw, weight, bias):
    """Conv2d(in, out, 3, stride=1, padding=1) + ReLU.

    x_nchw : (N, Cin, H, W)  float32
    weight : (Cout, Cin, 3, 3)  (PyTorch OIHW layout)
    bias   : (Cout,)
    returns: (N, Cout, H, W)  float32
    """
    N, Cin, H, W = x_nchw.shape
    Cout = weight.shape[0]
    HW = H * W
    pad = W + 1                      # covers the kh = -1 / +1 halo rows + corner taps
    padlen = HW + 2 * pad

    # Batch-tile size: fold batches onto the lane axis until the GEMM is at
    # least ~1024 lanes wide (or N is exhausted); keep the grid evenly divisible.
    NB = 1
    for cand in range(min(N, max(1, 1024 // HW)), 0, -1):
        if N % cand == 0:
            NB = cand
            break

    # No transposes on the activation path: NCHW -> (N, Cin, H*W) is a reshape.
    x_flat = x_nchw.reshape(N, Cin, HW)
    x_pad = jnp.pad(x_flat, ((0, 0), (0, 0), (pad, pad))).astype(jnp.bfloat16)

    # Weights: (Cout, Cin, kh, kw) -> (Cout, kh, kw, Cin) -> (Cout, 9*Cin),
    # matching the tap-major / channel-minor staging order in the kernel.
    w_col = jnp.transpose(weight, (0, 2, 3, 1)).reshape(Cout, 9 * Cin)
    w_col = w_col.astype(jnp.bfloat16)
    b_col = bias.reshape(Cout, 1).astype(jnp.float32)

    kernel = _make_conv3x3_relu_kernel(H, W, Cin, Cout, NB)

    # TODO(synk): for large H*W (block >> VMEM budget), add an H-tile grid axis
    # with halo handling (pl.Element / manual DMA); moot at this size.
    out_flat = pl.pallas_call(
        kernel,
        out_shape=jax.ShapeDtypeStruct((N, Cout, HW), x_nchw.dtype),
        grid_spec=pltpu.PrefetchScalarGridSpec(
            num_scalar_prefetch=0,
            grid=(N // NB,),
            in_specs=[
                pl.BlockSpec((NB, Cin, padlen), lambda n: (n, 0, 0)),
                pl.BlockSpec((Cout, 9 * Cin), lambda n: (0, 0)),
                pl.BlockSpec((Cout, 1), lambda n: (0, 0)),
            ],
            out_specs=pl.BlockSpec((NB, Cout, HW), lambda n: (n, 0, 0)),
        ),
        compiler_params=pltpu.CompilerParams(
            dimension_semantics=("parallel",)),
    )(x_pad, w_col, b_col)

    # Output reshapes straight back to NCHW (contiguous, no transpose).
    return out_flat.reshape(N, Cout, H, W)


if __name__ == "__main__":
    key = jax.random.PRNGKey(0)
    k_x, k_w, k_b = jax.random.split(key, 3)

    N, Cin, H, W = 2, 4, 16, 16
    Cout = 8

    x = jax.random.normal(k_x, (N, Cin, H, W), dtype=jnp.float32)
    # deterministic parameter init (roughly kaiming-uniform scale)
    fan_in = Cin * 3 * 3
    bound = 1.0 / (fan_in ** 0.5)
    weight = jax.random.uniform(k_w, (Cout, Cin, 3, 3), dtype=jnp.float32,
                                minval=-bound, maxval=bound)
    bias = jax.random.uniform(k_b, (Cout,), dtype=jnp.float32,
                              minval=-bound, maxval=bound)

    out = classic_unit_forward(x, weight, bias)
    jax.block_until_ready(out)

    # sanity check against a plain-JAX f32 reference of the same conv+relu
    ref = lax.conv_general_dilated(
        x, weight, window_strides=(1, 1), padding=((1, 1), (1, 1)),
        dimension_numbers=("NCHW", "OIHW", "NCHW"))
    ref = jnp.maximum(ref + bias[None, :, None, None], 0.0)
    assert out.shape == (N, Cout, H, W)
    # bf16 MXU operands (f32 accumulation) -> tolerance loosened vs f32 reference.
    assert jnp.allclose(out, ref, atol=5e-2, rtol=5e-2)

    print("KERNEL_OK")
</pallas_src>

<mosaic_0001>
module attributes {stable_mosaic.version = 11 : i64} {
  func.func @kernel(%arg0: i32, %arg1: memref<2x4x290xbf16, #tpu.memory_space<vmem>>, %arg2: memref<8x36xbf16, #tpu.memory_space<vmem>>, %arg3: memref<8x1xf32, #tpu.memory_space<vmem>>, %arg4: memref<2x8x256xf32, #tpu.memory_space<vmem>>) attributes {dimension_semantics = [#tpu.dimension_semantics<parallel>], iteration_bounds = array<i64: 1>, scalar_prefetch = 0 : i64, scratch_operands = 0 : i64, tpu.core_type = #tpu.core_type<tc>, window_params = [{transform_indices = @transform_0, window_bounds = array<i64: 2, 4, 290>}, {pipeline_mode = #tpu.pipeline_mode<synchronous>, transform_indices = @transform_1, window_bounds = array<i64: 8, 36>}, {pipeline_mode = #tpu.pipeline_mode<synchronous>, transform_indices = @transform_2, window_bounds = array<i64: 8, 1>}, {transform_indices = @transform_3, window_bounds = array<i64: 2, 8, 256>}]} {
    %0 = tpu.iota {dimensions = array<i32: 1>} : vector<1x512xi32>
    %c16_i32 = arith.constant 16 : i32
    %c0_i32 = arith.constant 0 : i32
    %1 = arith.cmpi eq, %c16_i32, %c0_i32 : i32
    %c1_i32 = arith.constant 1 : i32
    %2 = arith.select %1, %c1_i32, %c16_i32 : i32
    %3 = vector.broadcast %2 : i32 to vector<1x512xi32>
    %4 = arith.remsi %0, %3 : vector<1x512xi32>
    %c0_i32_0 = arith.constant 0 : i32
    %5 = vector.broadcast %c0_i32_0 : i32 to vector<1x512xi32>
    %6 = arith.cmpi ne, %4, %5 : vector<1x512xi32>
    %c0_i32_1 = arith.constant 0 : i32
    %7 = vector.broadcast %c0_i32_1 : i32 to vector<1x512xi32>
    %8 = arith.cmpi slt, %4, %7 : vector<1x512xi32>
    %c0_i32_2 = arith.constant 0 : i32
    %9 = arith.cmpi slt, %2, %c0_i32_2 : i32
    %10 = vector.broadcast %9 : i1 to vector<1x512xi1>
    %11 = vector.broadcast %10 : vector<1x512xi1> to vector<1x512xi1>
    %12 = arith.xori %8, %11 : vector<1x512xi1>
    %13 = arith.andi %12, %6 : vector<1x512xi1>
    %14 = vector.broadcast %2 : i32 to vector<1x512xi32>
    %15 = arith.addi %4, %14 : vector<1x512xi32>
    %16 = arith.select %13, %15, %4 : vector<1x512xi1>, vector<1x512xi32>
    %c0_i32_3 = arith.constant 0 : i32
    %17 = vector.broadcast %c0_i32_3 : i32 to vector<1x512xi32>
    %18 = arith.cmpi ne, %16, %17 : vector<1x512xi32>
    %c15_i32 = arith.constant 15 : i32
    %19 = vector.broadcast %c15_i32 : i32 to vector<1x512xi32>
    %20 = arith.cmpi ne, %16, %19 : vector<1x512xi32>
    %c0 = arith.constant 0 : index
    %c0_4 = arith.constant 0 : index
    %c0_5 = arith.constant 0 : index
    %21 = vector.load %arg1[%c0, %c0_4, %c0_5] : memref<2x4x290xbf16, #tpu.memory_space<vmem>>, vector<1x4x256xbf16>
    %22 = vector.shape_cast %21 : vector<1x4x256xbf16> to vector<4x256xbf16>
    %c1 = arith.constant 1 : index
    %c0_6 = arith.constant 0 : index
    %c0_7 = arith.constant 0 : index
    %23 = vector.load %arg1[%c1, %c0_6, %c0_7] : memref<2x4x290xbf16, #tpu.memory_space<vmem>>, vector<1x4x256xbf16>
    %24 = vector.shape_cast %23 : vector<1x4x256xbf16> to vector<4x256xbf16>
    %25 = tpu.concatenate %22, %24 in 1 : vector<4x256xbf16>, vector<4x256xbf16> -> vector<4x512xbf16>
    %c0_i32_8 = arith.constant 0 : i32
    %26 = arith.sitofp %c0_i32_8 : i32 to bf16
    %27 = vector.shape_cast %18 : vector<1x512xi1> to vector<1x512xi1>
    %28 = vector.broadcast %27 : vector<1x512xi1> to vector<4x512xi1>
    %29 = vector.broadcast %26 : bf16 to vector<4x512xbf16>
    %30 = arith.select %28, %25, %29 : vector<4x512xi1>, vector<4x512xbf16>
    %c0_9 = arith.constant 0 : index
    %c0_10 = arith.constant 0 : index
    %c1_11 = arith.constant 1 : index
    %31 = vector.load %arg1[%c0_9, %c0_10, %c1_11] : memref<2x4x290xbf16, #tpu.memory_space<vmem>>, vector<1x4x256xbf16>
    %32 = vector.shape_cast %31 : vector<1x4x256xbf16> to vector<4x256xbf16>
    %c1_12 = arith.constant 1 : index
    %c0_13 = arith.constant 0 : index
    %c1_14 = arith.constant 1 : index
    %33 = vector.load %arg1[%c1_12, %c0_13, %c1_14] : memref<2x4x290xbf16, #tpu.memory_space<vmem>>, vector<1x4x256xbf16>
    %34 = vector.shape_cast %33 : vector<1x4x256xbf16> to vector<4x256xbf16>
    %35 = tpu.concatenate %32, %34 in 1 : vector<4x256xbf16>, vector<4x256xbf16> -> vector<4x512xbf16>
    %c0_15 = arith.constant 0 : index
    %c0_16 = arith.constant 0 : index
    %c2 = arith.constant 2 : index
    %36 = vector.load %arg1[%c0_15, %c0_16, %c2] : memref<2x4x290xbf16, #tpu.memory_space<vmem>>, vector<1x4x256xbf16>
    %37 = vector.shape_cast %36 : vector<1x4x256xbf16> to vector<4x256xbf16>
    %c1_17 = arith.constant 1 : index
    %c0_18 = arith.constant 0 : index
    %c2_19 = arith.constant 2 : index
    %38 = vector.load %arg1[%c1_17, %c0_18, %c2_19] : memref<2x4x290xbf16, #tpu.memory_space<vmem>>, vector<1x4x256xbf16>
    %39 = vector.shape_cast %38 : vector<1x4x256xbf16> to vector<4x256xbf16>
    %40 = tpu.concatenate %37, %39 in 1 : vector<4x256xbf16>, vector<4x256xbf16> -> vector<4x512xbf16>
    %c0_i32_20 = arith.constant 0 : i32
    %41 = arith.sitofp %c0_i32_20 : i32 to bf16
    %42 = vector.shape_cast %20 : vector<1x512xi1> to vector<1x512xi1>
    %43 = vector.broadcast %42 : vector<1x512xi1> to vector<4x512xi1>
    %44 = vector.broadcast %41 : bf16 to vector<4x512xbf16>
    %45 = arith.select %43, %40, %44 : vector<4x512xi1>, vector<4x512xbf16>
    %c0_21 = arith.constant 0 : index
    %c0_22 = arith.constant 0 : index
    %c16 = arith.constant 16 : index
    %46 = vector.load %arg1[%c0_21, %c0_22, %c16] : memref<2x4x290xbf16, #tpu.memory_space<vmem>>, vector<1x4x256xbf16>
    %47 = vector.shape_cast %46 : vector<1x4x256xbf16> to vector<4x256xbf16>
    %c1_23 = arith.constant 1 : index
    %c0_24 = arith.constant 0 : index
    %c16_25 = arith.constant 16 : index
    %48 = vector.load %arg1[%c1_23, %c0_24, %c16_25] : memref<2x4x290xbf16, #tpu.memory_space<vmem>>, vector<1x4x256xbf16>
    %49 = vector.shape_cast %48 : vector<1x4x256xbf16> to vector<4x256xbf16>
    %50 = tpu.concatenate %47, %49 in 1 : vector<4x256xbf16>, vector<4x256xbf16> -> vector<4x512xbf16>
    %c0_i32_26 = arith.constant 0 : i32
    %51 = arith.sitofp %c0_i32_26 : i32 to bf16
    %52 = vector.shape_cast %18 : vector<1x512xi1> to vector<1x512xi1>
    %53 = vector.broadcast %52 : vector<1x512xi1> to vector<4x512xi1>
    %54 = vector.broadcast %51 : bf16 to vector<4x512xbf16>
    %55 = arith.select %53, %50, %54 : vector<4x512xi1>, vector<4x512xbf16>
    %c0_27 = arith.constant 0 : index
    %c0_28 = arith.constant 0 : index
    %c17 = arith.constant 17 : index
    %56 = vector.load %arg1[%c0_27, %c0_28, %c17] : memref<2x4x290xbf16, #tpu.memory_space<vmem>>, vector<1x4x256xbf16>
    %57 = vector.shape_cast %56 : vector<1x4x256xbf16> to vector<4x256xbf16>
    %c1_29 = arith.constant 1 : index
    %c0_30 = arith.constant 0 : index
    %c17_31 = arith.constant 17 : index
    %58 = vector.load %arg1[%c1_29, %c0_30, %c17_31] : memref<2x4x290xbf16, #tpu.memory_space<vmem>>, vector<1x4x256xbf16>
    %59 = vector.shape_cast %58 : vector<1x4x256xbf16> to vector<4x256xbf16>
    %60 = tpu.concatenate %57, %59 in 1 : vector<4x256xbf16>, vector<4x256xbf16> -> vector<4x512xbf16>
    %c0_32 = arith.constant 0 : index
    %c0_33 = arith.constant 0 : index
    %c18 = arith.constant 18 : index
    %61 = vector.load %arg1[%c0_32, %c0_33, %c18] : memref<2x4x290xbf16, #tpu.memory_space<vmem>>, vector<1x4x256xbf16>
    %62 = vector.shape_cast %61 : vector<1x4x256xbf16> to vector<4x256xbf16>
    %c1_34 = arith.constant 1 : index
    %c0_35 = arith.constant 0 : index
    %c18_36 = arith.constant 18 : index
    %63 = vector.load %arg1[%c1_34, %c0_35, %c18_36] : memref<2x4x290xbf16, #tpu.memory_space<vmem>>, vector<1x4x256xbf16>
    %64 = vector.shape_cast %63 : vector<1x4x256xbf16> to vector<4x256xbf16>
    %65 = tpu.concatenate %62, %64 in 1 : vector<4x256xbf16>, vector<4x256xbf16> -> vector<4x512xbf16>
    %c0_i32_37 = arith.constant 0 : i32
    %66 = arith.sitofp %c0_i32_37 : i32 to bf16
    %67 = vector.shape_cast %20 : vector<1x512xi1> to vector<1x512xi1>
    %68 = vector.broadcast %67 : vector<1x512xi1> to vector<4x512xi1>
    %69 = vector.broadcast %66 : bf16 to vector<4x512xbf16>
    %70 = arith.select %68, %65, %69 : vector<4x512xi1>, vector<4x512xbf16>
    %c0_38 = arith.constant 0 : index
    %c0_39 = arith.constant 0 : index
    %c32 = arith.constant 32 : index
    %71 = vector.load %arg1[%c0_38, %c0_39, %c32] : memref<2x4x290xbf16, #tpu.memory_space<vmem>>, vector<1x4x256xbf16>
    %72 = vector.shape_cast %71 : vector<1x4x256xbf16> to vector<4x256xbf16>
    %c1_40 = arith.constant 1 : index
    %c0_41 = arith.constant 0 : index
    %c32_42 = arith.constant 32 : index
    %73 = vector.load %arg1[%c1_40, %c0_41, %c32_42] : memref<2x4x290xbf16, #tpu.memory_space<vmem>>, vector<1x4x256xbf16>
    %74 = vector.shape_cast %73 : vector<1x4x256xbf16> to vector<4x256xbf16>
    %75 = tpu.concatenate %72, %74 in 1 : vector<4x256xbf16>, vector<4x256xbf16> -> vector<4x512xbf16>
    %c0_i32_43 = arith.constant 0 : i32
    %76 = arith.sitofp %c0_i32_43 : i32 to bf16
    %77 = vector.shape_cast %18 : vector<1x512xi1> to vector<1x512xi1>
    %78 = vector.broadcast %77 : vector<1x512xi1> to vector<4x512xi1>
    %79 = vector.broadcast %76 : bf16 to vector<4x512xbf16>
    %80 = arith.select %78, %75, %79 : vector<4x512xi1>, vector<4x512xbf16>
    %c0_44 = arith.constant 0 : index
    %c0_45 = arith.constant 0 : index
    %c33 = arith.constant 33 : index
    %81 = vector.load %arg1[%c0_44, %c0_45, %c33] : memref<2x4x290xbf16, #tpu.memory_space<vmem>>, vector<1x4x256xbf16>
    %82 = vector.shape_cast %81 : vector<1x4x256xbf16> to vector<4x256xbf16>
    %c1_46 = arith.constant 1 : index
    %c0_47 = arith.constant 0 : index
    %c33_48 = arith.constant 33 : index
    %83 = vector.load %arg1[%c1_46, %c0_47, %c33_48] : memref<2x4x290xbf16, #tpu.memory_space<vmem>>, vector<1x4x256xbf16>
    %84 = vector.shape_cast %83 : vector<1x4x256xbf16> to vector<4x256xbf16>
    %85 = tpu.concatenate %82, %84 in 1 : vector<4x256xbf16>, vector<4x256xbf16> -> vector<4x512xbf16>
    %c0_49 = arith.constant 0 : index
    %c0_50 = arith.constant 0 : index
    %c34 = arith.constant 34 : index
    %86 = vector.load %arg1[%c0_49, %c0_50, %c34] : memref<2x4x290xbf16, #tpu.memory_space<vmem>>, vector<1x4x256xbf16>
    %87 = vector.shape_cast %86 : vector<1x4x256xbf16> to vector<4x256xbf16>
    %c1_51 = arith.constant 1 : index
    %c0_52 = arith.constant 0 : index
    %c34_53 = arith.constant 34 : index
    %88 = vector.load %arg1[%c1_51, %c0_52, %c34_53] : memref<2x4x290xbf16, #tpu.memory_space<vmem>>, vector<1x4x256xbf16>
    %89 = vector.shape_cast %88 : vector<1x4x256xbf16> to vector<4x256xbf16>
    %90 = tpu.concatenate %87, %89 in 1 : vector<4x256xbf16>, vector<4x256xbf16> -> vector<4x512xbf16>
    %c0_i32_54 = arith.constant 0 : i32
    %91 = arith.sitofp %c0_i32_54 : i32 to bf16
    %92 = vector.shape_cast %20 : vector<1x512xi1> to vector<1x512xi1>
    %93 = vector.broadcast %92 : vector<1x512xi1> to vector<4x512xi1>
    %94 = vector.broadcast %91 : bf16 to vector<4x512xbf16>
    %95 = arith.select %93, %90, %94 : vector<4x512xi1>, vector<4x512xbf16>
    %96 = tpu.concatenate %30, %35, %45, %55, %60, %70, %80, %85, %95 in 0 : vector<4x512xbf16>, vector<4x512xbf16>, vector<4x512xbf16>, vector<4x512xbf16>, vector<4x512xbf16>, vector<4x512xbf16>, vector<4x512xbf16>, vector<4x512xbf16>, vector<4x512xbf16> -> vector<36x512xbf16>
    %c0_55 = arith.constant 0 : index
    %c0_56 = arith.constant 0 : index
    %97 = vector.load %arg2[%c0_55, %c0_56] : memref<8x36xbf16, #tpu.memory_space<vmem>>, vector<8x36xbf16>
    %cst = arith.constant dense<0.000000e+00> : vector<8x512xf32>
    %98 = tpu.matmul %97, %96, %cst {dimension_numbers = #tpu.dot_dimension_numbers<[1], [0], [0], [1], [0, 0, 1, 1], [], []>} : vector<8x36xbf16>, vector<36x512xbf16>, vector<8x512xf32> -> vector<8x512xf32>
    %c0_57 = arith.constant 0 : index
    %c0_58 = arith.constant 0 : index
    %99 = vector.load %arg3[%c0_57, %c0_58] : memref<8x1xf32, #tpu.memory_space<vmem>>, vector<8x1xf32>
    %100 = vector.broadcast %99 : vector<8x1xf32> to vector<8x512xf32>
    %101 = arith.addf %98, %100 : vector<8x512xf32>
    %cst_59 = arith.constant 0.000000e+00 : f32
    %102 = vector.broadcast %cst_59 : f32 to vector<8x512xf32>
    %103 = arith.maximumf %101, %102 : vector<8x512xf32>
    %104 = vector.extract_strided_slice %103 {offsets = [0, 0], sizes = [8, 256], strides = [1, 1]} : vector<8x512xf32> to vector<8x256xf32>
    %c0_60 = arith.constant 0 : index
    %c0_61 = arith.constant 0 : index
    %c0_62 = arith.constant 0 : index
    %105 = vector.load %arg4[%c0_60, %c0_61, %c0_62] : memref<2x8x256xf32, #tpu.memory_space<vmem>>, vector<1x8x256xf32>
    %106 = vector.shape_cast %105 : vector<1x8x256xf32> to vector<8x256xf32>
    %107 = vector.shape_cast %104 : vector<8x256xf32> to vector<1x8x256xf32>
    tpu.vector_store %arg4[%c0_60, %c0_61, %c0_62], %107 {strides = array<i32>} : memref<2x8x256xf32, #tpu.memory_space<vmem>>, vector<1x8x256xf32>,
    %108 = vector.extract_strided_slice %103 {offsets = [0, 256], sizes = [8, 256], strides = [1, 1]} : vector<8x512xf32> to vector<8x256xf32>
    %c1_63 = arith.constant 1 : index
    %c0_64 = arith.constant 0 : index
    %c0_65 = arith.constant 0 : index
    %109 = vector.load %arg4[%c1_63, %c0_64, %c0_65] : memref<2x8x256xf32, #tpu.memory_space<vmem>>, vector<1x8x256xf32>
    %110 = vector.shape_cast %109 : vector<1x8x256xf32> to vector<8x256xf32>
    %111 = vector.shape_cast %108 : vector<8x256xf32> to vector<1x8x256xf32>
    tpu.vector_store %arg4[%c1_63, %c0_64, %c0_65], %111 {strides = array<i32>} : memref<2x8x256xf32, #tpu.memory_space<vmem>>, vector<1x8x256xf32>,
    return
  }
  func.func @transform_0(%arg0: i32) -> (i32, i32, i32) {
    %c0_i32 = arith.constant 0 : i32
    %c0_i32_0 = arith.constant 0 : i32
    %c0_i32_1 = arith.constant 0 : i32
    return %arg0, %c0_i32, %c0_i32_0 : i32, i32, i32
  }
  func.func @transform_1(%arg0: i32) -> (i32, i32) {
    %c0_i32 = arith.constant 0 : i32
    %c0_i32_0 = arith.constant 0 : i32
    %c0_i32_1 = arith.constant 0 : i32
    return %c0_i32, %c0_i32_0 : i32, i32
  }
  func.func @transform_2(%arg0: i32) -> (i32, i32) {
    %c0_i32 = arith.constant 0 : i32
    %c0_i32_0 = arith.constant 0 : i32
    %c0_i32_1 = arith.constant 0 : i32
    return %c0_i32, %c0_i32_0 : i32, i32
  }
  func.func @transform_3(%arg0: i32) -> (i32, i32, i32) {
    %c0_i32 = arith.constant 0 : i32
    %c0_i32_0 = arith.constant 0 : i32
    %c0_i32_1 = arith.constant 0 : i32
    return %arg0, %c0_i32, %c0_i32_0 : i32, i32, i32
  }
}

</mosaic_0001>

<bundles_post_ra>
// kernel: tpu_custom_call.1
= control target key start
LH: loop header
LB: loop body
LE: loop exit
PB: predicated region body
PF: predicated region fallthrough
CT: control target
= control target key end

     0   :  { %8 = vsyncpa [#allocation3], 0  ;;  %s1067_s0 = inlined_call_operand.hbm [shape: bf16[2,4,290], index: 0, kind: input, shape index: {}]   ;;  %s1068_s1 = inlined_call_operand.vmem [shape: bf16[8,36], index: 1, kind: input, shape index: {}]   ;;  %s1069_s2 = inlined_call_operand.vmem [shape: f32[8,1], index: 2, kind: input, shape index: {}]   ;;  %s1070_s3 = inlined_call_operand.hbm [shape: f32[2,8,256], index: 3, kind: output, shape index: {}]  }
   0x1   :  { %9 = vsyncpa [#allocation4], 0  ;;  %s708_s12 = smov [#allocation2]   ;;  %s660_s16 = scalar_lea.hbm %s1067_s0, 192 }
   0x2   :  { %s15_s13 = sshll.u32 %s708_s12, 4  ;;  %p661_p0 = scmp.ne.s32.totalorder %s1067_s0, %s660_s16  ;;  %s16_s13 = int_to_ptr.vmem [resolvable:$true] %s15_s13 }
   0x3   :  { %p664_p1 = scmp.lt.u32.totalorder %s660_s16, %s1067_s0 }
   0x5   :  { %p666_p2 = pnand %p664_p1, %p661_p0 }
   0x7   :  { %669 = shalt.err (!%p666_p2)
}
   0x8   :  { %s670_s21 = scalar_lea.vmem %s16_s13, 192  ;;  %p675_p4 = scmp.lt.s32.totalorder %s16_s13, %s16_s13 }
   0x9   :  { %p671_p3 = scmp.ne.s32.totalorder %s16_s13, %s670_s21  ;;  %p676_p5 = scmp.lt.s32.totalorder %s670_s21, %s670_s21 }
   0xb   :  { %p677_p6 = por %p676_p5, %p675_p4 }
   0xd   :  { %p678_p7 = pnand %p677_p6, %p671_p3 }
   0xf   :  { %681 = shalt.err (!%p678_p7)
}
  0x10   :  { %s709_s22 = smov 96   ;;  %s710_s23 = smov 6  }
  0x11   :  { %21 = dma.hbm_to_vmem [thread:$0]  %s1067_s0, 192, %s16_s13, [#allocation3], %s709_s22, %s709_s22, %s710_s23  }
  0x12   :  { %704 = dma.done.wait [#allocation3], 192  }
  0x13   :  { %705 = vsyncadd [#allocation3], 4294967104  ;;  %v32_v0 = vlaneseq  ;;  %v711_v1 = vmov 1983009808   ;;  %v712_v5 = vmov 0   ;;  %s713_s0 = smov 127  }
  0x14   :  { %v159_v2 = vunpack.c.l.s4 %v711_v1  ;;  %560 = vmatprep.mubr.bf16.mxu0 %v712_v5  ;;  %601 = vmatprep.mubr.bf16.mxu1 %v712_v5  ;;  %v155_v15 = vld [vmem:[#allocation2 + $0x6] sm:$0x3f]  ;;  %v154_v16 = vld [vmem:[#allocation2] sm:$0x3f]  ;;  %s714_s26 = smov 126   ;;  %s715_s27 = smov 112  }
  0x15   :  { %v131_v3 = vshrl.u32 %v32_v0, 7  ;;  %v33_v4 = vand.u32 127, %v32_v0  ;;  %657 = vset.pattern.permute.xlu0 %v712_v5  ;;  %v183_v21 = vcombine.high %v155_v15, %v155_v15  ;;  %v157_v22 = vcombine.high %v154_v16, %v154_v16  ;;  %s716_s28 = smov 110   ;;  %s717_s29 = smov 111   ;;  %v506_v44 = vld [vmem:[%s1069_s2] sm:$0xff] }
  0x16   :  { %v160_v6 = vunpack.c.0.s8 %v159_v2  ;;  %s718_s30 = smov 95   ;;  %s719_s4 = smov 94   ;;  %v636_v53 = vld.sshfl [vmem:[#allocation2] sm:$0x33 pattern:$0x76325410] }
  0x17   :  { %v34_v7 = vadd.s32 128, %v33_v4  ;;  %v41_v8 = vand.u32 15, %v33_v4  ;;  %v35_v9 = vadd.s32 256, %v33_v4  ;;  %v36_v11 = vadd.s32 384, %v33_v4 }
  0x18   :  { %v163_v10 = vsub.s32 %v160_v6, %v131_v3  ;;  %v789_v28 = vsub.s32 4, %v131_v3  ;;  %v809_v34 = vsub.s32 0, %v131_v3  ;;  %v637_v54 = vld.sshfl [vmem:[#allocation2 + $0x6] sm:$0x33 pattern:$0x76325410]  ;;  %v104_v57 = vcombine.high %v636_v53, %v636_v53 }
  0x19   :  { %v48_v12 = vand.u32 15, %v34_v7  ;;  %vm757_vm0 = vcmp.ne.s32.totalorder %v41_v8, 15  ;;  %v55_v14 = vand.u32 15, %v35_v9  ;;  %v62_v17 = vand.u32 15, %v36_v11 }
  0x1a   :  { %vm761_vm1 = vcmp.ne.s32.totalorder %v41_v8, 0  ;;  %v765_v19 = vrot.slane %v155_v15, %v163_v10  ;;  %v767_v20 = vrot.slane %v154_v16, %v163_v10  ;;  %v793_v29 = vrot.slane %v183_v21, %v163_v10 }
  0x1b   :  { %vm90_vm2 = vcmp.ne.s32.totalorder %v48_v12, 15  ;;  %vm769_vm3 = vcmp.ne.s32.totalorder %v55_v14, 15  ;;  %vm773_vm4 = vcmp.ne.s32.totalorder %v62_v17, 15  ;;  %vm777_vm5 = vcmp.ne.s32.totalorder %v48_v12, 0 }
  0x1c   :  { %v783_v26 = vcombine.high %v765_v19, %v765_v19  ;;  %v787_v27 = vcombine.high %v767_v20, %v767_v20  ;;  %vm236_vm6 = vmpackc.low %vm90_vm2, %vm757_vm0  ;;  %vm87_vm8 = vcmp.ne.s32.totalorder %v55_v14, 0  ;;  %vm88_vm9 = vcmp.ne.s32.totalorder %v62_v17, 0 }
  0x1d   :  { %v795_v30 = vsel %vm236_vm6, 65537, %v712_v5  ;;  %vm237_vm7 = vmpackc.low %vm773_vm4, %vm769_vm3  ;;  %v803_v31 = vrot.slane %v157_v22, %v163_v10  ;;  %vm213_vm12 = vcmask 1031168   ;;  %vm179_vm13 = vcmask 1039360  }
  0x1e   :  { %201 = vrot.lane.b32.xlu1 %v783_v26, %s713_s0  ;;  %175 = vrot.lane.b32.xlu0 %v787_v27, %s713_s0  ;;  %v247_v32 = vrot.slane %v795_v30, %v789_v28  ;;  %v807_v33 = vsel %vm237_vm7, 65537, %v712_v5  ;;  %vm126_vm10 = vmpackc.low %vm777_vm5, %vm761_vm1  ;;  %v243_v43 = vrot.slane %v795_v30, %v809_v34  ;;  %vm438_vm14 = vcmask 1041408  }
  0x1f   :  { %v255_v35 = vrot.slane %v807_v33, %v789_v28  ;;  %v817_v36 = vsel %vm126_vm10, 65537, %v712_v5  ;;  %vm127_vm11 = vmpackc.low %vm88_vm9, %vm87_vm8  ;;  %v251_v42 = vrot.slane %v807_v33, %v809_v34  ;;  %vm451_vm15 = vcmask 1043456  }
  0x20   :  { %v137_v37 = vrot.slane %v817_v36, %v789_v28  ;;  %v821_v38 = vsel %vm127_vm11, 65537, %v712_v5  ;;  %v133_v39 = vrot.slane %v817_v36, %v809_v34  ;;  %v115_v61 = vcombine.high %v637_v54, %v637_v54 }
  0x21   :  { %v145_v40 = vrot.slane %v821_v38, %v789_v28  ;;  %v141_v41 = vrot.slane %v821_v38, %v809_v34  ;;  %vm900_vm1 = vcmp.ne.s16.totalorder %v247_v32, 0  ;;  %vm908_vm2 = vcmp.ne.s16.totalorder %v255_v35, 0 }
  0x22   :  { %203 = vrot.lane.b32.xlu1 %v793_v29, %s713_s0  ;;  %177 = vrot.lane.b32.xlu0 %v803_v31, %s713_s0  ;;  %vm893_vm0 = vcmp.ne.s16.totalorder %v133_v39, 0  ;;  %vm922_vm4 = vcmp.ne.s16.totalorder %v251_v42, 0  ;;  %vm929_vm5 = vcmp.ne.s16.totalorder %v243_v43, 0  ;;  %vm936_vm6 = vcmp.ne.s16.totalorder %v137_v37, 0 }
  0x23   :  { %vm915_vm3 = vcmp.ne.s16.totalorder %v141_v41, 0  ;;  %vm943_vm7 = vcmp.ne.s16.totalorder %v145_v40, 0  ;;  %v150_v11 = vsel %vm893_vm0, %v636_v53, 0  ;;  %vm270_vm8 = vcmask 916480  }
  0x24   :  { %v152_v15 = vsel %vm915_vm3, %v637_v54, 0  ;;  %v151_v22 = vsel %vm936_vm6, %v104_v57, 0  ;;  %vm460_vm9 = vcmask 1045504   ;;  %v153_v41 = vsel %vm943_vm7, %v115_v61, 0 }
  0x25   :  { %vm312_vm10 = vcmask 900096   ;;  %vm337_vm11 = vcmask 785408  }
  0x26   :  { %211 = vrot.lane.b32.xlu1 %v803_v31, %s714_s26  ;;  %209 = vrot.lane.b32.xlu0 %v787_v27, %s714_s26 }
  0x2a   :  { %222 = vrot.lane.b32.xlu1 %v793_v29, %s714_s26  ;;  %220 = vrot.lane.b32.xlu0 %v783_v26, %s714_s26 }
  0x2e   :  { %199 = vrot.lane.b32.xlu1 %v765_v19, %s713_s0  ;;  %173 = vrot.lane.b32.xlu0 %v767_v20, %s713_s0 }
  0x32   :  { %218 = vrot.lane.b32.xlu1 %v765_v19, %s714_s26  ;;  %207 = vrot.lane.b32.xlu0 %v767_v20, %s714_s26 }
  0x36   :  { %268 = vrot.lane.b32.xlu1 %v803_v31, %s715_s27  ;;  %266 = vrot.lane.b32.xlu0 %v787_v27, %s715_s27 }
  0x3a   :  { %279 = vrot.lane.b32.xlu1 %v793_v29, %s715_s27  ;;  %277 = vrot.lane.b32.xlu0 %v783_v26, %s715_s27 }
  0x3e   :  { %275 = vrot.lane.b32.xlu1 %v765_v19, %s715_s27  ;;  %264 = vrot.lane.b32.xlu0 %v767_v20, %s715_s27 }
  0x42   :  { %310 = vrot.lane.b32.xlu1 %v803_v31, %s716_s28  ;;  %308 = vrot.lane.b32.xlu0 %v787_v27, %s716_s28 }
  0x46   :  { %321 = vrot.lane.b32.xlu1 %v793_v29, %s716_s28  ;;  %319 = vrot.lane.b32.xlu0 %v783_v26, %s716_s28 }
  0x4a   :  { %317 = vrot.lane.b32.xlu1 %v765_v19, %s716_s28  ;;  %306 = vrot.lane.b32.xlu0 %v767_v20, %s716_s28 }
  0x4e   :  { %335 = vrot.lane.b32.xlu1 %v803_v31, %s709_s22  ;;  %333 = vrot.lane.b32.xlu0 %v787_v27, %s709_s22 }
  0x52   :  { %346 = vrot.lane.b32.xlu1 %v793_v29, %s709_s22  ;;  %344 = vrot.lane.b32.xlu0 %v783_v26, %s709_s22 }
  0x56   :  { %342 = vrot.lane.b32.xlu1 %v765_v19, %s709_s22  ;;  %331 = vrot.lane.b32.xlu0 %v767_v20, %s709_s22 }
  0x5a   :  { %293 = vrot.lane.b32.xlu1 %v803_v31, %s717_s29  ;;  %291 = vrot.lane.b32.xlu0 %v787_v27, %s717_s29 }
  0x5e   :  { %302 = vrot.lane.b32.xlu1 %v793_v29, %s717_s29  ;;  %300 = vrot.lane.b32.xlu0 %v783_v26, %s717_s29 }
  0x62   :  { %360 = vrot.lane.b32.xlu1 %v803_v31, %s718_s30  ;;  %358 = vrot.lane.b32.xlu0 %v787_v27, %s718_s30 }
  0x66   :  { %369 = vrot.lane.b32.xlu1 %v793_v29, %s718_s30  ;;  %367 = vrot.lane.b32.xlu0 %v783_v26, %s718_s30 }
  0x6a   :  { %298 = vrot.lane.b32.xlu1 %v765_v19, %s717_s29  ;;  %289 = vrot.lane.b32.xlu0 %v767_v20, %s717_s29 }
  0x6e   :  { %365 = vrot.lane.b32.xlu1 %v765_v19, %s718_s30  ;;  %356 = vrot.lane.b32.xlu0 %v767_v20, %s718_s30 }
  0x72   :  { %375 = vrot.lane.b32.xlu1 %v787_v27, %s719_s4  ;;  %373 = vrot.lane.b32.xlu0 %v767_v20, %s719_s4 }
  0x76   :  { %384 = vrot.lane.b32.xlu1 %v765_v19, %s719_s4  ;;  %377 = vrot.lane.b32.xlu0 %v803_v31, %s719_s4 }
  0x7a   :  { %388 = vrot.lane.b32.xlu1 %v793_v29, %s719_s4  ;;  %386 = vrot.lane.b32.xlu0 %v783_v26, %s719_s4 }
  0x7e   :  { %509 = vperm.xlu0 %657, %v506_v44  }
  0x90   :  { %v202_v45 = vpop.permute.xlu1 %201  ;;  %v176_v46 = vpop.permute.xlu0 %175 }
  0x94   :  { %v204_v47 = vpop.permute.xlu1 %203  ;;  %v178_v48 = vpop.permute.xlu0 %177 }
  0x95   :  { %v181_v6 = vsel %vm179_vm13, %v176_v46, %v178_v48  ;;  %v206_v23 = vsel %vm179_vm13, %v202_v45, %v204_v47 }
  0x96   :  { %v399_v19 = vrot.slane %v181_v6, 6  ;;  %v401_v34 = vrot.slane %v206_v23, 6 }
  0x98   :  { %v212_v49 = vpop.permute.xlu1 %211  ;;  %v210_v50 = vpop.permute.xlu0 %209  ;;  %v444_v36 = vsel %vm438_vm14, %v151_v22, %v399_v19 }
  0x99   :  { %v215_v63 = vsel %vm213_vm12, %v210_v50, %v212_v49 }
  0x9a   :  { %v261_v12 = vsel %vm900_vm1, %v215_v63, 0 }
  0x9b   :  { %v407_v24 = vrot.slane %v261_v12, 4 }
  0x9c   :  { %v223_v51 = vpop.permute.xlu1 %222  ;;  %v221_v52 = vpop.permute.xlu0 %220 }
  0x9d   :  { %v225_v16 = vsel %vm213_vm12, %v221_v52, %v223_v51  ;;  %v455_v40 = vsel %vm451_vm15, %v444_v36, %v407_v24 }
  0x9e   :  { %v263_v29 = vsel %vm908_vm2, %v225_v16, 0 }
  0x9f   :  { %v409_v37 = vrot.slane %v263_v29, 4 }
  0xa0   :  { %v200_v55 = vpop.permute.xlu1 %199  ;;  %v174_v56 = vpop.permute.xlu0 %173 }
  0xa1   :  { %v205_v58 = vsel %vm179_vm13, %v200_v55, %v202_v45  ;;  %v180_v59 = vsel %vm179_vm13, %v174_v56, %v176_v46  ;;  %v450_v46 = vsel %vm438_vm14, %v153_v41, %v401_v34  ;;  %vm362_vm13 = vcmask 777216  }
  0xa2   :  { %v400_v7 = vrot.slane %v205_v58, 6  ;;  %v398_v8 = vrot.slane %v180_v59, 6  ;;  %v459_v49 = vsel %vm451_vm15, %v450_v46, %v409_v37 }
  0xa4   :  { %v219_v9 = vpop.permute.xlu1 %218  ;;  %v208_v10 = vpop.permute.xlu0 %207  ;;  %v441_v27 = vsel %vm438_vm14, %v150_v11, %v398_v8  ;;  %v447_v28 = vsel %vm438_vm14, %v152_v15, %v400_v7 }
  0xa5   :  { %v224_v13 = vsel %vm213_vm12, %v219_v9, %v221_v52  ;;  %v214_v14 = vsel %vm213_vm12, %v208_v10, %v210_v50  ;;  %vm295_vm12 = vcmask 908288  }
  0xa6   :  { %v262_v17 = vsel %vm922_vm4, %v224_v13, 0  ;;  %v260_v18 = vsel %vm929_vm5, %v214_v14, 0 }
  0xa7   :  { %v408_v20 = vrot.slane %v262_v17, 4  ;;  %v406_v21 = vrot.slane %v260_v18, 4 }
  0xa8   :  { %v269_v25 = vpop.permute.xlu1 %268  ;;  %v267_v26 = vpop.permute.xlu0 %266 }
  0xa9   :  { %v272_v30 = vsel %vm270_vm8, %v267_v26, %v269_v25  ;;  %v453_v31 = vsel %vm451_vm15, %v441_v27, %v406_v21  ;;  %v457_v32 = vsel %vm451_vm15, %v447_v28, %v408_v20 }
  0xaa   :  { %v286_v33 = vsel %vm936_vm6, %v272_v30, 0 }
  0xab   :  { %v415_v35 = vrot.slane %v286_v33, 2 }
  0xac   :  { %v280_v38 = vpop.permute.xlu1 %279  ;;  %v278_v39 = vpop.permute.xlu0 %277 }
  0xad   :  { %v282_v42 = vsel %vm270_vm8, %v278_v39, %v280_v38  ;;  %v465_v43 = vsel %vm460_vm9, %v455_v40, %v415_v35 }
  0xae   :  { %v288_v44 = vsel %vm943_vm7, %v282_v42, 0  ;;  %528 = vmatprep.subr.bf16.mxu0 %v465_v43 }
  0xaf   :  { %v417_v45 = vrot.slane %v288_v44, 2 }
  0xb0   :  { %v276_v47 = vpop.permute.xlu1 %275  ;;  %v265_v48 = vpop.permute.xlu0 %264 }
  0xb1   :  { %v281_v50 = vsel %vm270_vm8, %v276_v47, %v278_v39  ;;  %v271_v51 = vsel %vm270_vm8, %v265_v48, %v267_v26  ;;  %v471_v52 = vsel %vm460_vm9, %v459_v49, %v417_v45 }
  0xb2   :  { %v287_v53 = vsel %vm915_vm3, %v281_v50, 0  ;;  %v285_v54 = vsel %vm893_vm0, %v271_v51, 0  ;;  %569 = vmatprep.subr.bf16.mxu1 %v471_v52 }
  0xb3   :  { %v416_v55 = vrot.slane %v287_v53, 2  ;;  %v414_v56 = vrot.slane %v285_v54, 2 }
  0xb4   :  { %v311_v57 = vpop.permute.xlu1 %310  ;;  %v309_v58 = vpop.permute.xlu0 %308 }
  0xb5   :  { %v462_v59 = vsel %vm460_vm9, %v453_v31, %v414_v56  ;;  %v468_v61 = vsel %vm460_vm9, %v457_v32, %v416_v55  ;;  %v314_v15 = vsel %vm312_vm10, %v309_v58, %v311_v57 }
  0xb6   :  { %529 = vmatpush1.bf16.msra.mxu0 %v462_v59  ;;  %570 = vmatpush1.bf16.msra.mxu1 %v468_v61  ;;  %v328_v18 = vsel %vm900_vm1, %v314_v15, 0 }
  0xb7   :  { %v423_v24 = vrot.slane %v328_v18, 6 }
  0xb8   :  { %v322_v63 = vpop.permute.xlu1 %321  ;;  %v320_v6 = vpop.permute.xlu0 %319 }
  0xb9   :  { %v324_v19 = vsel %vm312_vm10, %v320_v6, %v322_v63 }
  0xba   :  { %v330_v25 = vsel %vm908_vm2, %v324_v19, 0 }
  0xbb   :  { %v425_v31 = vrot.slane %v330_v25, 6 }
  0xbc   :  { %v318_v7 = vpop.permute.xlu1 %317  ;;  %v307_v8 = vpop.permute.xlu0 %306 }
  0xbd   :  { %v323_v35 = vsel %vm312_vm10, %v318_v7, %v320_v6  ;;  %v313_v36 = vsel %vm312_vm10, %v307_v8, %v309_v58 }
  0xbe   :  { %v329_v45 = vsel %vm922_vm4, %v323_v35, 0  ;;  %v327_v5 = vsel %vm929_vm5, %v313_v36, 0 }
  0xbf   :  { %v424_v52 = vrot.slane %v329_v45, 6  ;;  %v422_v53 = vrot.slane %v327_v5, 6 }
  0xc0   :  { %v336_v9 = vpop.permute.xlu1 %335  ;;  %v334_v10 = vpop.permute.xlu0 %333 }
  0xc1   :  { %v339_v20 = vsel %vm337_vm11, %v334_v10, %v336_v9 }
  0xc2   :  { %v353_v26 = vsel %vm936_vm6, %v339_v20, 0 }
  0xc3   :  { %v431_v32 = vrot.slane %v353_v26, 4  ;;  %v505_v26 = vld [vmem:[%s1068_s1] sm:$0xf]  ;;  %s720_s1 = smov [#allocation5]  }
  0xc4   :  { %v347_v11 = vpop.permute.xlu1 %346  ;;  %v345_v12 = vpop.permute.xlu0 %344  ;;  %s624_s8 = sshll.u32 %s720_s1, 4  ;;  %s625_s8 = int_to_ptr.vmem [resolvable:$true] %s624_s8 }
  0xc5   :  { %v349_v27 = vsel %vm337_vm11, %v345_v12, %v347_v11  ;;  %s682_s9 = scalar_lea.vmem %s625_s8, 512  ;;  %p687_p9 = scmp.lt.s32.totalorder %s625_s8, %s625_s8 }
  0xc6   :  { %v355_v4 = vsel %vm943_vm7, %v349_v27, 0  ;;  %p683_p8 = scmp.ne.s32.totalorder %s625_s8, %s682_s9  ;;  %p688_p10 = scmp.lt.s32.totalorder %s682_s9, %s682_s9 }
  0xc7   :  { %v433_v46 = vrot.slane %v355_v4, 4 }
  0xc8   :  { %v343_v13 = vpop.permute.xlu1 %342  ;;  %v332_v14 = vpop.permute.xlu0 %331  ;;  %p689_p11 = por %p688_p10, %p687_p9 }
  0xc9   :  { %v348_v38 = vsel %vm337_vm11, %v343_v13, %v345_v12  ;;  %v338_v39 = vsel %vm337_vm11, %v332_v14, %v334_v10 }
  0xca   :  { %v354_v48 = vsel %vm915_vm3, %v348_v38, 0  ;;  %v352_v49 = vsel %vm893_vm0, %v338_v39, 0  ;;  %vm379_vm0 = vcmask 769024   ;;  %p690_p12 = pnand %p689_p11, %p683_p8 }
  0xcb   :  { %v432_v57 = vrot.slane %v354_v48, 4  ;;  %v430_v58 = vrot.slane %v352_v49, 4 }
  0xcc   :  { %v294_v16 = vpop.permute.xlu1 %293  ;;  %v292_v17 = vpop.permute.xlu0 %291 }
  0xcd   :  { %v297_v23 = vsel %vm295_vm12, %v292_v17, %v294_v16 }
  0xce   :  { %v478_v28 = vsel %vm438_vm14, %v297_v23, %v423_v24 }
  0xcf   :  { %v488_v40 = vsel %vm451_vm15, %v478_v28, %v431_v32 }
  0xd0   :  { %v303_v21 = vpop.permute.xlu1 %302  ;;  %v301_v22 = vpop.permute.xlu0 %300 }
  0xd1   :  { %v305_v33 = vsel %vm295_vm12, %v301_v22, %v303_v21 }
  0xd2   :  { %v484_v41 = vsel %vm438_vm14, %v305_v33, %v425_v31 }
  0xd3   :  { %v492_v51 = vsel %vm451_vm15, %v484_v41, %v433_v46 }
  0xd4   :  { %v361_v29 = vpop.permute.xlu1 %360  ;;  %v359_v30 = vpop.permute.xlu0 %358 }
  0xd5   :  { %v364_v34 = vsel %vm362_vm13, %v359_v30, %v361_v29 }
  0xd6   :  { %v435_v37 = vrot.slane %v364_v34, 2 }
  0xd8   :  { %v370_v42 = vpop.permute.xlu1 %369  ;;  %v368_v43 = vpop.permute.xlu0 %367  ;;  %v497_v44 = vsel %vm460_vm9, %v488_v40, %v435_v37 }
  0xd9   :  { %v372_v47 = vsel %vm362_vm13, %v368_v43, %v370_v42  ;;  %530 = vmatprep.subr.bf16.mxu0 %v497_v44 }
  0xda   :  { %v437_v50 = vrot.slane %v372_v47, 2 }
  0xdc   :  { %v299_v54 = vpop.permute.xlu1 %298  ;;  %v290_v55 = vpop.permute.xlu0 %289  ;;  %v503_v56 = vsel %vm460_vm9, %v492_v51, %v437_v50 }
  0xdd   :  { %v304_v59 = vsel %vm295_vm12, %v299_v54, %v301_v22  ;;  %v296_v61 = vsel %vm295_vm12, %v290_v55, %v292_v17  ;;  %571 = vmatprep.subr.bf16.mxu1 %v503_v56 }
  0xde   :  { %v481_v1 = vsel %vm438_vm14, %v304_v59, %v424_v52  ;;  %v475_v60 = vsel %vm438_vm14, %v296_v61, %v422_v53 }
  0xdf   :  { %v486_v63 = vsel %vm451_vm15, %v475_v60, %v430_v58  ;;  %v490_v6 = vsel %vm451_vm15, %v481_v1, %v432_v57  ;;  %vm512_vm15 = vcmask 293888  }
  0xe0   :  { %v366_v7 = vpop.permute.xlu1 %365  ;;  %v357_v8 = vpop.permute.xlu0 %356 }
  0xe1   :  { %v371_v9 = vsel %vm362_vm13, %v366_v7, %v368_v43  ;;  %v363_v10 = vsel %vm362_vm13, %v357_v8, %v359_v30 }
  0xe2   :  { %v436_v11 = vrot.slane %v371_v9, 2  ;;  %v434_v12 = vrot.slane %v363_v10, 2 }
  0xe4   :  { %v376_v13 = vpop.permute.xlu1 %375  ;;  %v374_v14 = vpop.permute.xlu0 %373  ;;  %v494_v15 = vsel %vm460_vm9, %v486_v63, %v434_v12  ;;  %v500_v16 = vsel %vm460_vm9, %v490_v6, %v436_v11 }
  0xe5   :  { %v380_v17 = vsel %vm379_vm0, %v374_v14, %v376_v13  ;;  %531 = vmatpush1.bf16.msra.mxu0 %v494_v15  ;;  %572 = vmatpush1.bf16.msra.mxu1 %v500_v16 }
  0xe6   :  { %v394_v20 = vsel %vm929_vm5, %v380_v17, 0 }
  0xe7   :  { %v517_v23 = vsel %vm438_vm14, %v394_v20, 0 }
  0xe8   :  { %v385_v18 = vpop.permute.xlu1 %384  ;;  %v378_v19 = vpop.permute.xlu0 %377 }
  0xe9   :  { %v381_v21 = vsel %vm379_vm0, %v376_v13, %v378_v19 }
  0xea   :  { %v395_v22 = vsel %vm900_vm1, %v381_v21, 0 }
  0xeb   :  { %638 = vmatprep.subr.msk.bf16.mxu0 %vm438_vm14, %v395_v22 }
  0xec   :  { %v389_v24 = vpop.permute.xlu1 %388  ;;  %v387_v25 = vpop.permute.xlu0 %386  ;;  %533 = vmatpush1.bf16.msra.mxu0 %v517_v23 }
  0xed   :  { %v390_v3 = vsel %vm379_vm0, %v385_v18, %v387_v25  ;;  %v391_v27 = vsel %vm379_vm0, %v387_v25, %v389_v24 }
  0xee   :  { %v397_v62 = vsel %vm908_vm2, %v391_v27, 0  ;;  %v396_v28 = vsel %vm922_vm4, %v390_v3, 0 }
  0xef   :  { %640 = vmatprep.subr.msk.bf16.mxu1 %vm438_vm14, %v397_v62  ;;  %639 = vmatmul.mubr.msk.bf16.vlgmr.msra.gmra.mrb[0].mxu0 %vm512_vm15, %v505_v26  ;;  %v523_v29 = vsel %vm438_vm14, %v396_v28, 0 }
  0xf0   :  { %574 = vmatpush1.bf16.msra.mxu1 %v523_v29 }
  0xf3   :  { %641 = vmatmul.mubr.msk.bf16.vlgmr.msra.gmra.mrb[0].mxu1 %vm512_vm15, %v505_v26 }
  0xfd   :  { %v510_v30 = vpop.permute.xlu0 %509 }
 0x1c2   :  { %v562_v31 = vpop.f32.mrb[0].mxu0 }
 0x1c3   :  { %v564_v32 = vpop.f32.mrb[1].mxu0  ;;  %v563_v33 = vadd.f32 %v562_v31, %v510_v30 }
 0x1c4   :  { %v566_v34 = vpop.f32.mrb[2].mxu0  ;;  %v565_v35 = vadd.f32 %v564_v32, %v510_v30 }
 0x1c5   :  { %v610_v36 = vmax.f32 %v563_v33, 0.0  ;;  %v567_v4 = vpop.f32.mrb[3].mxu0 }
 0x1c6   :  { %v611_v0 = vmax.f32 %v565_v35, 0.0  ;;  %v603_v37 = vpop.f32.mrb[0].mxu1 }
 0x1c7   :  { %614 = vst [vmem:[#allocation5] sm:$0xff] %v610_v36  ;;  %v604_v2 = vadd.f32 %v603_v37, %v510_v30  ;;  %v605_v38 = vpop.f32.mrb[1].mxu1 }
 0x1c8   :  { %615 = vst [vmem:[#allocation5 + $0x8] sm:$0xff] %v611_v0  ;;  %v606_v39 = vadd.f32 %v605_v38, %v510_v30  ;;  %v607_v40 = vpop.f32.mrb[2].mxu1 }
 0x1c9   :  { %v612_v41 = vmax.f32 %v604_v2, 0.0  ;;  %v608_v42 = vpop.f32.mrb[3].mxu1 }
 0x1ca   :  { %v613_v43 = vmax.f32 %v606_v39, 0.0 }
 0x1cb   :  { %617 = vst [vmem:[#allocation5 + $0x10] sm:$0xff] %v612_v41 }
 0x1cc   :  { %618 = vst [vmem:[#allocation5 + $0x18] sm:$0xff] %v613_v43 }
 0x1cd   :  { %693 = shalt.err (!%p690_p12)
}
 0x1ce   :  { %s694_s12 = scalar_lea.hbm %s1070_s3, 512 }
 0x1cf   :  { %p695_p13 = scmp.ne.s32.totalorder %s1070_s3, %s694_s12  ;;  %p698_p0 = scmp.lt.u32.totalorder %s694_s12, %s1070_s3 }
 0x1d1   :  { %p700_p1 = pnand %p698_p0, %p695_p13 }
 0x1d3   :  { %703 = shalt.err (!%p700_p1)
}
 0x1d4   :  { %s721_s17 = smov 256   ;;  %s722_s18 = smov 16  }
 0x1d5   :  { %630 = dma.vmem_to_hbm [thread:$0]  %s625_s8, 512, %s1070_s3, [#allocation4], %s721_s17, %s721_s17, %s722_s18  }
 0x1d6   :  { %706 = dma.done.wait [#allocation4], 512  }
 0x1d7   :  { %707 = vsyncadd [#allocation4], 4294966784 }
 0x1d8   :  { %634 = vsyncpa [#allocation3], 1 }
 0x1d9   :  { %635 = vsyncpa [#allocation4], 1 }

</bundles_post_ra>
